<compile_context>
chip_gen: v5e
topology: v5e:2x2
jax: 0.10.0
libtpu: 0.0.40
codegen_flags: <defaults>
</compile_context>

<pallas_src>
import math

import jax
import jax.numpy as jnp
from jax.experimental import pallas as pl
from jax.experimental.pallas import tpu as pltpu


def _layerscale_kernel(x_ref, scale_ref, o_ref):
    # x_ref: (TILE_M, D2), scale_ref: (1, D2) -> sublane-broadcast multiply.
    o_ref[...] = x_ref[...] * scale_ref[...]


def _fold_factor(num_rows: int, dim: int) -> int:
    """Smallest k s.t. k*dim % 128 == 0 and k divides num_rows (else 1)."""
    if dim % 128 == 0:
        return 1
    k = 128 // math.gcd(dim, 128)
    if k > 1 and num_rows % k == 0:
        return k
    return 1


def layer_scale(x: jax.Array, scale: jax.Array) -> jax.Array:
    """x: (B, N, D), scale: (1, 1, D). Returns x * scale (broadcast over D)."""
    B, N, D = x.shape
    assert scale.shape == (1, 1, D)

    # Match dtypes so the kernel is a single vmul per vreg (no hidden cast).
    scale = scale.astype(x.dtype)
    itemsize = jnp.dtype(x.dtype).itemsize

    # Flatten batch/seq and (if needed) fold rows into the lane axis so the
    # last dim of every block is a multiple of 128 (lane-dense stores).
    M = B * N
    k = _fold_factor(M, D)
    M2 = M // k
    D2 = D * k
    x2 = x.reshape(M2, D2)
    scale2 = jnp.tile(scale.reshape(D), (k,)).reshape(1, D2)

    # Fixed VMEM-budgeted row tile: ~2 MiB per block => with double buffering
    # of input + output (~8 MiB) we fit every generation's scoped VMEM,
    # including v5e's 16 MiB default and v7x's 64 MiB physical VMEM.
    target_block_bytes = 2 * 1024 * 1024
    tile_m = target_block_bytes // max(D2 * itemsize, 1)
    tile_m = max(8, (tile_m // 8) * 8)
    tile_m = min(tile_m, 2048)
    if tile_m >= M2:
        tile_m = M2  # full extent: always a legal block shape

    grid_m = pl.cdiv(M2, tile_m)

    out2 = pl.pallas_call(
        _layerscale_kernel,
        out_shape=jax.ShapeDtypeStruct((M2, D2), x.dtype),
        grid_spec=pltpu.PrefetchScalarGridSpec(
            num_scalar_prefetch=0,
            grid=(grid_m,),
            in_specs=[
                pl.BlockSpec((tile_m, D2), lambda i: (i, 0)),
                # Constant block index -> scale stays resident in VMEM.
                pl.BlockSpec((1, D2), lambda i: (0, 0)),
            ],
            out_specs=pl.BlockSpec((tile_m, D2), lambda i: (i, 0)),
        ),
        compiler_params=pltpu.CompilerParams(
            dimension_semantics=("parallel",),
            vmem_limit_bytes=32 * 1024 * 1024,
        ),
        cost_estimate=pl.CostEstimate(
            flops=M * D,
            transcendentals=0,
            bytes_accessed=2 * M * D * itemsize + D * itemsize,
        ),
    )(x2, scale2)

    return out2.reshape(B, N, D)


def make_layerscale_params(dim: int, depth: int, dtype=jnp.float32) -> jax.Array:
    # Deterministic init mirroring the PyTorch __init__.
    if depth <= 18:
        init_eps = 0.1
    elif depth <= 24:
        init_eps = 1e-5
    else:
        init_eps = 1e-6
    return jnp.full((1, 1, dim), init_eps, dtype=dtype)


if __name__ == "__main__":
    B, N, D = 2, 8, 32
    depth = 12  # -> init_eps = 0.1

    key = jax.random.PRNGKey(0)
    x = jax.random.normal(key, (B, N, D), dtype=jnp.float32)
    scale = make_layerscale_params(D, depth)

    out = layer_scale(x, scale)
    jax.block_until_ready(out)

    # Reference check in plain JAX.
    ref = x * scale
    assert out.shape == (B, N, D)
    assert jnp.allclose(out, ref, atol=1e-6, rtol=1e-6)

    print("KERNEL_OK")
</pallas_src>

<mosaic_0001>
module attributes {stable_mosaic.version = 11 : i64} {
  func.func @_layerscale_kernel(%arg0: i32, %arg1: memref<4x128xf32, #tpu.memory_space<vmem>>, %arg2: memref<1x128xf32, #tpu.memory_space<vmem>>, %arg3: memref<4x128xf32, #tpu.memory_space<vmem>>) attributes {dimension_semantics = [#tpu.dimension_semantics<parallel>], iteration_bounds = array<i64: 1>, scalar_prefetch = 0 : i64, scratch_operands = 0 : i64, tpu.core_type = #tpu.core_type<tc>, window_params = [{transform_indices = @transform_0, window_bounds = array<i64: 4, 128>}, {pipeline_mode = #tpu.pipeline_mode<synchronous>, transform_indices = @transform_1, window_bounds = array<i64: 1, 128>}, {transform_indices = @transform_2, window_bounds = array<i64: 4, 128>}]} {
    %c0 = arith.constant 0 : index
    %c0_0 = arith.constant 0 : index
    %0 = vector.load %arg1[%c0, %c0_0] : memref<4x128xf32, #tpu.memory_space<vmem>>, vector<4x128xf32>
    %c0_1 = arith.constant 0 : index
    %c0_2 = arith.constant 0 : index
    %1 = vector.load %arg2[%c0_1, %c0_2] : memref<1x128xf32, #tpu.memory_space<vmem>>, vector<1x128xf32>
    %2 = vector.broadcast %1 : vector<1x128xf32> to vector<4x128xf32>
    %3 = arith.mulf %0, %2 : vector<4x128xf32>
    %c0_3 = arith.constant 0 : index
    %c0_4 = arith.constant 0 : index
    %4 = vector.load %arg3[%c0_3, %c0_4] : memref<4x128xf32, #tpu.memory_space<vmem>>, vector<4x128xf32>
    tpu.vector_store %arg3[%c0_3, %c0_4], %3 {strides = array<i32>} : memref<4x128xf32, #tpu.memory_space<vmem>>, vector<4x128xf32>,
    return
  }
  func.func @transform_0(%arg0: i32) -> (i32, i32) {
    %c0_i32 = arith.constant 0 : i32
    %c0_i32_0 = arith.constant 0 : i32
    return %arg0, %c0_i32 : i32, i32
  }
  func.func @transform_1(%arg0: i32) -> (i32, i32) {
    %c0_i32 = arith.constant 0 : i32
    %c0_i32_0 = arith.constant 0 : i32
    %c0_i32_1 = arith.constant 0 : i32
    return %c0_i32, %c0_i32_0 : i32, i32
  }
  func.func @transform_2(%arg0: i32) -> (i32, i32) {
    %c0_i32 = arith.constant 0 : i32
    %c0_i32_0 = arith.constant 0 : i32
    return %arg0, %c0_i32 : i32, i32
  }
}

</mosaic_0001>

<bundles_post_ra>
// kernel: tpu_custom_call.1
= control target key start
LH: loop header
LB: loop body
LE: loop exit
PB: predicated region body
PF: predicated region fallthrough
CT: control target
= control target key end

     0   :  { %7 = vsyncpa [#allocation3], 0  ;;  %s174_s0 = inlined_call_operand.hbm [shape: f32[4,128], index: 0, kind: input, shape index: {}]   ;;  %s175_s1 = inlined_call_operand.hbm [shape: f32[1,128], index: 1, kind: input, shape index: {}]   ;;  %s176_s2 = inlined_call_operand.hbm [shape: f32[4,128], index: 2, kind: output, shape index: {}]  }
   0x1   :  { %8 = vsyncpa [#allocation6], 0 }
   0x2   :  { %9 = vsyncpa [#allocation4], 0  ;;  %s15_s11 = sshll.u32 %s174_s0, 4  ;;  %s147_s12 = smov [#allocation2]   ;;  %s16_s11 = int_to_ptr.hbm [resolvable:$true] %s15_s11 }
   0x3   :  { %s17_s13 = sshll.u32 %s147_s12, 4  ;;  %s26_s16 = sshll.u32 %s175_s1, 4  ;;  %s18_s13 = int_to_ptr.vmem [resolvable:$true] %s17_s13  ;;  %s27_s16 = int_to_ptr.hbm [resolvable:$true] %s26_s16 }
   0x4   :  { %20 = dma.hbm_to_vmem [thread:$0]  %s16_s11, 64, %s18_s13, [#allocation3]  }
   0x5   :  { %s148_s17 = smov [#allocation5]  }
   0x6   :  { %s28_s18 = sshll.u32 %s148_s17, 4  ;;  %s29_s18 = int_to_ptr.vmem [resolvable:$true] %s28_s18 }
   0x7   :  { %31 = dma.hbm_to_vmem [thread:$0]  %s27_s16, 16, %s29_s18, [#allocation6]  }
   0x8   :  { %141 = dma.done.wait [#allocation3], 64  }
   0x9   :  { %142 = vsyncadd [#allocation3], 4294967232 }
   0xa   :  { %143 = dma.done.wait [#allocation6], 16  }
   0xb   :  { %144 = vsyncadd [#allocation6], 4294967280  ;;  %s149_s19 = smov [#allocation7]   ;;  %s54_s22 = sshll.u32 %s176_s2, 4  ;;  %v40_v0 = vld [vmem:[#allocation2] sm:$0xf]  ;;  %s55_s22 = int_to_ptr.hbm [resolvable:$true] %s54_s22 }
   0xc   :  { %s52_s0 = sshll.u32 %s149_s19, 4  ;;  %v68_v1 = vld [vmem:[#allocation5] ss:$0 sm:$0xff]  ;;  %s53_s0 = int_to_ptr.vmem [resolvable:$true] %s52_s0 }
   0xd   :  { %v45_v2 = vmul.f32 %v68_v1, %v40_v0 }
   0xf   :  { %46 = vst [vmem:[#allocation7] sm:$0xf] %v45_v2 }
  0x10   :  { %57 = dma.vmem_to_hbm [thread:$0]  %s53_s0, 64, %s55_s22, [#allocation4]  }
  0x11   :  { %145 = dma.done.wait [#allocation4], 64  }
  0x12   :  { %146 = vsyncadd [#allocation4], 4294967232 }
  0x13   :  { %62 = vsyncpa [#allocation3], 1 }
  0x14   :  { %63 = vsyncpa [#allocation6], 1 }
  0x15   :  { %64 = vsyncpa [#allocation4], 1 }

</bundles_post_ra>
